<compile_context>
chip_gen: v7x
topology: tpu7x:2x2x1
jax: 0.10.0
libtpu: 0.0.40
codegen_flags: <defaults>
</compile_context>

<pallas_src>
import jax
import jax.numpy as jnp
from jax.experimental import pallas as pl
from jax.experimental.pallas import tpu as pltpu

HIDDEN = 60        # logical hidden width from the PyTorch module
HIDDEN_PAD = 64    # zero-padded hidden width (alignment); extra cols/rows are zeros
LANE = 128

# Tile-size policy: big tiles amortize the fixed per-grid-step cost (this kernel is
# overhead/DMA bound), capped so the per-step VMEM working set (double-buffered x plus
# h1/h2 temporaries, all lane-padded to 128) stays inside every generation's budget.
DEFAULT_BATCH_TILE = 8192
MAX_BATCH_TILE = 12288


def _round_up(n, m):
    return ((n + m - 1) // m) * m


def _pick_batch_tile(B, batch_tile):
    """Lane-aligned batch tile. Emits >=2 grid steps when B allows so the 'parallel'
    batch axis actually gives both v7x TensorCores work."""
    batch_tile = min(batch_tile, MAX_BATCH_TILE)
    tb = min(_round_up(batch_tile, LANE), _round_up(B, LANE))
    if B > tb:
        return tb                                   # multi-tile already
    if B >= 2 * LANE:                               # one tile would cover all of B: split in two
        return min(_round_up(pl.cdiv(B, 2), LANE), tb)
    return tb


def d_net_gauss_kernel(x_ref, w1_ref, b1_ref, w2_ref, b2_ref, w3_ref, b3_ref, o_ref):
    # x_ref: (TB, ENC) f32 batch tile; weights/biases are grid-resident (same block each step).
    x = x_ref[...]

    # lin1 -> (dropout = identity in eval mode) -> relu          [MXU + VPU]
    h1 = jnp.dot(x, w1_ref[...], preferred_element_type=jnp.float32) + b1_ref[...]
    h1 = jnp.maximum(h1, 0.0)

    # lin2 -> (dropout = identity in eval mode) -> relu          [MXU + VPU]
    h2 = jnp.dot(h1, w2_ref[...], preferred_element_type=jnp.float32) + b2_ref[...]
    h2 = jnp.maximum(h2, 0.0)

    # lin3 (out_features == 1): VPU multiply + XLU lane reduction instead of an N=1 MXU matmul.
    # NOTE: the cross-lane reduce + (TB,)->(1,TB) relayout is O(TB) XLU work; only restructure
    # (transposed formulation) if profiling shows the vector-extended slot binding.
    logits = jnp.sum(h2 * w3_ref[...], axis=-1) + b3_ref[0, 0]   # (TB,)

    # Lane-dense store: a (1, TB) row per tile instead of a masked (TB, 1) column.
    o_ref[...] = jax.nn.sigmoid(logits).reshape(1, -1).astype(o_ref.dtype)


def prepare_params(params):
    """One-time zero-padding of weights/biases (hidden 60 -> 64). Call at init, not per forward.
    Zeros are ReLU- and matmul-safe, so results are unchanged."""
    hp = HIDDEN_PAD - HIDDEN
    return {
        "w1": jnp.pad(params["w1"], ((0, 0), (0, hp))),
        "b1": jnp.pad(params["b1"], ((0, 0), (0, hp))),
        "w2": jnp.pad(params["w2"], ((0, hp), (0, hp))),
        "b2": jnp.pad(params["b2"], ((0, 0), (0, hp))),
        "w3": jnp.pad(params["w3"].reshape(1, HIDDEN), ((0, 0), (0, hp))),  # row vector (1, 64)
        "b3": params["b3"].reshape(1, 1),
    }


def d_net_gauss_forward(x, padded, *, batch_tile=DEFAULT_BATCH_TILE):
    """x: (B, encoding_size) float32, `padded` = prepare_params(raw_params).
    Returns (B, 1) float32 (PyTorch eval-mode forward)."""
    B, enc = x.shape

    # Batch tiling. No wrapper-side jnp.pad of x: the grid covers ceil(B / tb) blocks and
    # Pallas pads the boundary block on read / masks the boundary write.
    tb = _pick_batch_tile(B, batch_tile)
    n_tiles = pl.cdiv(B, tb)

    def resident(shape):
        return pl.BlockSpec(shape, lambda i: (0, 0))

    cost = pl.CostEstimate(
        flops=2 * B * (enc * HIDDEN_PAD + HIDDEN_PAD * HIDDEN_PAD + HIDDEN_PAD),
        transcendentals=B,
        bytes_accessed=4 * (B * enc + B
                            + enc * HIDDEN_PAD + HIDDEN_PAD * HIDDEN_PAD + 3 * HIDDEN_PAD + 1),
    )

    # Per-step VMEM: x tile is (tb, enc) but lane-padded to 128 in VMEM (~tb*512 B per buffer,
    # double-buffered); h1/h2/temporaries are ~tb*512 B each. Budget generously and raise the
    # scoped limit explicitly (safe: v5e/v6e 128 MiB physical, v7x 64 MiB per TC).
    vmem_limit = min(max(8 * tb * 512 + (2 << 20), 16 << 20), 48 << 20)

    out = pl.pallas_call(
        d_net_gauss_kernel,
        out_shape=jax.ShapeDtypeStruct((1, B), jnp.float32),
        grid=(n_tiles,),
        in_specs=[
            pl.BlockSpec((tb, enc), lambda i: (i, 0)),          # x: batch tile, double-buffered
            resident((enc, HIDDEN_PAD)),                        # w1 (resident across grid)
            resident((1, HIDDEN_PAD)),                          # b1
            resident((HIDDEN_PAD, HIDDEN_PAD)),                 # w2
            resident((1, HIDDEN_PAD)),                          # b2
            resident((1, HIDDEN_PAD)),                          # w3 (row vector)
            pl.BlockSpec(memory_space=pltpu.MemorySpace.SMEM),  # b3: scalar in SMEM
        ],
        out_specs=pl.BlockSpec((1, tb), lambda i: (0, i)),      # lane-dense output row
        compiler_params=pltpu.CompilerParams(
            dimension_semantics=("parallel",),                  # shard batch tiles across TCs
            vmem_limit_bytes=vmem_limit,
        ),
        cost_estimate=cost,
    )(x, padded["w1"], padded["b1"], padded["w2"], padded["b2"], padded["w3"], padded["b3"])

    # Restore PyTorch (B, 1) output shape.
    return out.reshape(B, 1)


def init_params(key, encoding_size):
    """PyTorch nn.Linear default init (uniform +-1/sqrt(fan_in)); weights stored (in, out) = W^T."""
    ks = jax.random.split(key, 6)

    def lin(kw, kb, fan_in, fan_out):
        bound = 1.0 / jnp.sqrt(jnp.float32(fan_in))
        w = jax.random.uniform(kw, (fan_in, fan_out), jnp.float32, -bound, bound)
        b = jax.random.uniform(kb, (1, fan_out), jnp.float32, -bound, bound)
        return w, b

    w1, b1 = lin(ks[0], ks[1], encoding_size, HIDDEN)
    w2, b2 = lin(ks[2], ks[3], HIDDEN, HIDDEN)
    w3, b3 = lin(ks[4], ks[5], HIDDEN, 1)
    return {"w1": w1, "b1": b1, "w2": w2, "b2": b2, "w3": w3, "b3": b3}


def _reference_forward(x, p):
    h1 = jnp.maximum(x @ p["w1"] + p["b1"], 0.0)
    h2 = jnp.maximum(h1 @ p["w2"] + p["b2"], 0.0)
    return jax.nn.sigmoid(h2 @ p["w3"] + p["b3"])


if __name__ == "__main__":
    key = jax.random.PRNGKey(0)
    k_x, k_x2, k_x3, k_p = jax.random.split(key, 4)

    encoding_size = 32
    params = init_params(k_p, encoding_size)
    padded = prepare_params(params)        # pad weights once, not per call

    fwd = jax.jit(d_net_gauss_forward, static_argnames=("batch_tile",))

    # Small case (single boundary-masked tile).
    x_small = jax.random.normal(k_x, (8, encoding_size), jnp.float32)
    out_small = jax.block_until_ready(fwd(x_small, padded))
    ref_small = _reference_forward(x_small, params)
    assert out_small.shape == (8, 1)
    assert jnp.allclose(out_small, ref_small, atol=1e-5, rtol=1e-5)

    # Multi-tile case with a small forced tile (exercises the batch grid + partial last tile).
    x_big = jax.random.normal(k_x2, (300, encoding_size), jnp.float32)
    out_big = jax.block_until_ready(fwd(x_big, padded, batch_tile=128))
    ref_big = _reference_forward(x_big, params)
    assert out_big.shape == (300, 1)
    assert jnp.allclose(out_big, ref_big, atol=1e-5, rtol=1e-5)

    # Default-tile case (exercises the >=2-tile split for v7x and boundary write masking).
    x_mid = jax.random.normal(k_x3, (1000, encoding_size), jnp.float32)
    out_mid = jax.block_until_ready(fwd(x_mid, padded))
    ref_mid = _reference_forward(x_mid, params)
    assert out_mid.shape == (1000, 1)
    assert jnp.allclose(out_mid, ref_mid, atol=1e-5, rtol=1e-5)

    print("KERNEL_OK")
</pallas_src>

<mosaic_0001>
module attributes {stable_mosaic.version = 11 : i64} {
  func.func @d_net_gauss_kernel(%arg0: i32, %arg1: memref<128x32xf32, #tpu.memory_space<vmem>>, %arg2: memref<32x64xf32, #tpu.memory_space<vmem>>, %arg3: memref<1x64xf32, #tpu.memory_space<vmem>>, %arg4: memref<64x64xf32, #tpu.memory_space<vmem>>, %arg5: memref<1x64xf32, #tpu.memory_space<vmem>>, %arg6: memref<1x64xf32, #tpu.memory_space<vmem>>, %arg7: memref<1x1xf32, #tpu.memory_space<smem>>, %arg8: memref<1x128xf32, #tpu.memory_space<vmem>>) attributes {dimension_semantics = [#tpu.dimension_semantics<parallel>], iteration_bounds = array<i64: 1>, scalar_prefetch = 0 : i64, scratch_operands = 0 : i64, tpu.core_type = #tpu.core_type<tc>, window_params = [{transform_indices = @transform_0, window_bounds = array<i64: 128, 32>}, {pipeline_mode = #tpu.pipeline_mode<synchronous>, transform_indices = @transform_1, window_bounds = array<i64: 32, 64>}, {pipeline_mode = #tpu.pipeline_mode<synchronous>, transform_indices = @transform_2, window_bounds = array<i64: 1, 64>}, {pipeline_mode = #tpu.pipeline_mode<synchronous>, transform_indices = @transform_3, window_bounds = array<i64: 64, 64>}, {pipeline_mode = #tpu.pipeline_mode<synchronous>, transform_indices = @transform_4, window_bounds = array<i64: 1, 64>}, {pipeline_mode = #tpu.pipeline_mode<synchronous>, transform_indices = @transform_5, window_bounds = array<i64: 1, 64>}, {transform_indices = @transform_6, window_bounds = array<i64: 1, 1>}, {transform_indices = @transform_7, window_bounds = array<i64: 1, 128>}]} {
    %c0 = arith.constant 0 : index
    %c0_0 = arith.constant 0 : index
    %0 = vector.load %arg1[%c0, %c0_0] : memref<128x32xf32, #tpu.memory_space<vmem>>, vector<128x32xf32>
    %c0_1 = arith.constant 0 : index
    %c0_2 = arith.constant 0 : index
    %1 = vector.load %arg2[%c0_1, %c0_2] : memref<32x64xf32, #tpu.memory_space<vmem>>, vector<32x64xf32>
    %cst = arith.constant dense<0.000000e+00> : vector<128x64xf32>
    %2 = tpu.matmul %0, %1, %cst {dimension_numbers = #tpu.dot_dimension_numbers<[1], [0], [0], [1], [0, 0, 1, 1], [], []>} : vector<128x32xf32>, vector<32x64xf32>, vector<128x64xf32> -> vector<128x64xf32>
    %c0_3 = arith.constant 0 : index
    %c0_4 = arith.constant 0 : index
    %3 = vector.load %arg3[%c0_3, %c0_4] : memref<1x64xf32, #tpu.memory_space<vmem>>, vector<1x64xf32>
    %4 = vector.broadcast %3 : vector<1x64xf32> to vector<128x64xf32>
    %5 = arith.addf %2, %4 : vector<128x64xf32>
    %cst_5 = arith.constant 0.000000e+00 : f32
    %6 = vector.broadcast %cst_5 : f32 to vector<128x64xf32>
    %7 = arith.maximumf %5, %6 : vector<128x64xf32>
    %c0_6 = arith.constant 0 : index
    %c0_7 = arith.constant 0 : index
    %8 = vector.load %arg4[%c0_6, %c0_7] : memref<64x64xf32, #tpu.memory_space<vmem>>, vector<64x64xf32>
    %cst_8 = arith.constant dense<0.000000e+00> : vector<128x64xf32>
    %9 = tpu.matmul %7, %8, %cst_8 {dimension_numbers = #tpu.dot_dimension_numbers<[1], [0], [0], [1], [0, 0, 1, 1], [], []>} : vector<128x64xf32>, vector<64x64xf32>, vector<128x64xf32> -> vector<128x64xf32>
    %c0_9 = arith.constant 0 : index
    %c0_10 = arith.constant 0 : index
    %10 = vector.load %arg5[%c0_9, %c0_10] : memref<1x64xf32, #tpu.memory_space<vmem>>, vector<1x64xf32>
    %11 = vector.broadcast %10 : vector<1x64xf32> to vector<128x64xf32>
    %12 = arith.addf %9, %11 : vector<128x64xf32>
    %cst_11 = arith.constant 0.000000e+00 : f32
    %13 = vector.broadcast %cst_11 : f32 to vector<128x64xf32>
    %14 = arith.maximumf %12, %13 : vector<128x64xf32>
    %c0_12 = arith.constant 0 : index
    %c0_13 = arith.constant 0 : index
    %15 = vector.load %arg6[%c0_12, %c0_13] : memref<1x64xf32, #tpu.memory_space<vmem>>, vector<1x64xf32>
    %16 = vector.broadcast %15 : vector<1x64xf32> to vector<128x64xf32>
    %17 = arith.mulf %14, %16 : vector<128x64xf32>
    %cst_14 = arith.constant dense<0.000000e+00> : vector<128xf32>
    %18 = vector.multi_reduction <add>, %17, %cst_14 [1] : vector<128x64xf32> to vector<128xf32>
    %c0_15 = arith.constant 0 : index
    %c0_16 = arith.constant 0 : index
    %19 = memref.load %arg7[%c0_15, %c0_16] : memref<1x1xf32, #tpu.memory_space<smem>>
    %20 = vector.broadcast %19 : f32 to vector<128xf32>
    %21 = arith.addf %18, %20 : vector<128xf32>
    %22 = arith.negf %21 : vector<128xf32>
    %23 = math.exp %22 : vector<128xf32>
    %cst_17 = arith.constant 1.000000e+00 : f32
    %24 = vector.broadcast %cst_17 : f32 to vector<128xf32>
    %25 = arith.addf %24, %23 : vector<128xf32>
    %26 = arith.divf %24, %25 : vector<128xf32>
    %27 = vector.shape_cast %26 : vector<128xf32> to vector<1x128xf32>
    %c0_18 = arith.constant 0 : index
    %c0_19 = arith.constant 0 : index
    %28 = vector.load %arg8[%c0_18, %c0_19] : memref<1x128xf32, #tpu.memory_space<vmem>>, vector<1x128xf32>
    tpu.vector_store %arg8[%c0_18, %c0_19], %27 {strides = array<i32>} : memref<1x128xf32, #tpu.memory_space<vmem>>, vector<1x128xf32>,
    return
  }
  func.func @transform_0(%arg0: i32) -> (i32, i32) {
    %c0_i32 = arith.constant 0 : i32
    %c0_i32_0 = arith.constant 0 : i32
    return %arg0, %c0_i32 : i32, i32
  }
  func.func @transform_1(%arg0: i32) -> (i32, i32) {
    %c0_i32 = arith.constant 0 : i32
    %c0_i32_0 = arith.constant 0 : i32
    %c0_i32_1 = arith.constant 0 : i32
    return %c0_i32, %c0_i32_0 : i32, i32
  }
  func.func @transform_2(%arg0: i32) -> (i32, i32) {
    %c0_i32 = arith.constant 0 : i32
    %c0_i32_0 = arith.constant 0 : i32
    %c0_i32_1 = arith.constant 0 : i32
    return %c0_i32, %c0_i32_0 : i32, i32
  }
  func.func @transform_3(%arg0: i32) -> (i32, i32) {
    %c0_i32 = arith.constant 0 : i32
    %c0_i32_0 = arith.constant 0 : i32
    %c0_i32_1 = arith.constant 0 : i32
    return %c0_i32, %c0_i32_0 : i32, i32
  }
  func.func @transform_4(%arg0: i32) -> (i32, i32) {
    %c0_i32 = arith.constant 0 : i32
    %c0_i32_0 = arith.constant 0 : i32
    %c0_i32_1 = arith.constant 0 : i32
    return %c0_i32, %c0_i32_0 : i32, i32
  }
  func.func @transform_5(%arg0: i32) -> (i32, i32) {
    %c0_i32 = arith.constant 0 : i32
    %c0_i32_0 = arith.constant 0 : i32
    %c0_i32_1 = arith.constant 0 : i32
    return %c0_i32, %c0_i32_0 : i32, i32
  }
  func.func @transform_6(%arg0: i32) -> (i32, i32) {
    %c0_i32 = arith.constant 0 : i32
    %c0_i32_0 = arith.constant 0 : i32
    %c0_i32_1 = arith.constant 0 : i32
    return %c0_i32, %c0_i32_0 : i32, i32
  }
  func.func @transform_7(%arg0: i32) -> (i32, i32) {
    %c0_i32 = arith.constant 0 : i32
    %c0_i32_0 = arith.constant 0 : i32
    return %c0_i32, %arg0 : i32, i32
  }
}

</mosaic_0001>

<bundles_post_ra>
// kernel: d_net_gauss_forward.1
= control target key start
LH: loop header
LB: loop body
LE: loop exit
PB: predicated region body
PF: predicated region fallthrough
CT: control target
= control target key end

     0   :  { %13 = vsyncpa [#allocation4], 0  ;;  %s1491_s0 = inlined_call_operand.hbm [shape: f32[8,32], index: 0, kind: input, shape index: {}]   ;;  %s1492_s1 = inlined_call_operand.hbm [shape: f32[32,64], index: 1, kind: input, shape index: {}]   ;;  %s1493_s2 = inlined_call_operand.vmem [shape: f32[1,64], index: 2, kind: input, shape index: {}]   ;;  %s1494_s3 = inlined_call_operand.hbm [shape: f32[64,64], index: 3, kind: input, shape index: {}]   ;;  %s1495_s4 = inlined_call_operand.vmem [shape: f32[1,64], index: 4, kind: input, shape index: {}]   ;;  %s1496_s5 = inlined_call_operand.vmem [shape: f32[1,64], index: 5, kind: input, shape index: {}]   ;;  %s1497_s6 = inlined_call_operand.<no memory space> [shape: f32[1,1], index: 6, kind: input, shape index: {}]   ;;  %s1498_s7 = inlined_call_operand.hbm [shape: f32[1,8], index: 7, kind: output, shape index: {}]  }
   0x1   :  { %14 = vsyncpa [#allocation7], 0 }
   0x2   :  { %15 = vsyncpa [#allocation5], 0 }
   0x3   :  { %20 = vsyncadd [#allocation4], 1920  ;;  %s1224_s24 = smov [#allocation6]   ;;  %s1225_s26 = smov [#allocation3]  }
   0x4   :  { %s33_s25 = sshll.u32 %s1224_s24, 4  ;;  %s21_s27 = sshll.u32 %s1225_s26, 4  ;;  %s34_s25 = int_to_ptr.vmem [resolvable:$true] %s33_s25  ;;  %s1270_s27 = int_to_ptr.vmem [resolvable:$true] %s21_s27 }
   0x5   :  { %s1130_s30 = scalar_lea.hbm %s1492_s1, 512 }
   0x6   :  { %p1131_p0 = scmp.ne.s32.totalorder %s1492_s1, %s1130_s30  ;;  %p1134_p1 = scmp.lt.u32.totalorder %s1130_s30, %s1492_s1 }
   0x8   :  { %p1136_p2 = pnand %p1134_p1, %p1131_p0 }
   0xa   :  { %1139 = shalt.err (!%p1136_p2)
}
   0xb   :  { %s1140_s12 = scalar_lea.vmem %s34_s25, 512  ;;  %p1145_p4 = scmp.lt.s32.totalorder %s34_s25, %s34_s25 }
   0xc   :  { %p1141_p3 = scmp.ne.s32.totalorder %s34_s25, %s1140_s12  ;;  %p1146_p5 = scmp.lt.s32.totalorder %s1140_s12, %s1140_s12 }
   0xe   :  { %p1147_p6 = por %p1146_p5, %p1145_p4 }
  0x10   :  { %p1148_p7 = pnand %p1147_p6, %p1141_p3 }
  0x12   :  { %1151 = shalt.err (!%p1148_p7)
}
  0x13   :  { %s1226_s13 = smov 128   ;;  %s1227_s14 = smov 8  }
  0x14   :  { %39 = dma.hbm_to_vmem [thread:$0]  %s1492_s1, 512, %s34_s25, [#allocation7], %s1226_s13, %s1226_s13, %s1227_s14  }
  0x15   :  { %s1152_s19 = scalar_lea.hbm %s1491_s0, 128 }
  0x16   :  { %p1153_p8 = scmp.ne.s32.totalorder %s1491_s0, %s1152_s19  ;;  %p1156_p9 = scmp.lt.u32.totalorder %s1152_s19, %s1491_s0 }
  0x18   :  { %p1158_p10 = pnand %p1156_p9, %p1153_p8 }
  0x1a   :  { %1161 = shalt.err (!%p1158_p10)
}
  0x1b   :  { %s1162_s24 = scalar_lea.vmem %s1270_s27, 128  ;;  %s1166_s1 = scalar_lea.vmem %s1270_s27, 2048 }
  0x1c   :  { %p1163_p11 = scmp.ne.s32.totalorder %s1270_s27, %s1162_s24  ;;  %p1167_p12 = scmp.lt.s32.totalorder %s1270_s27, %s1270_s27 }
  0x1d   :  { %p1168_p13 = scmp.lt.s32.totalorder %s1166_s1, %s1162_s24 }
  0x1f   :  { %p1169_p0 = por %p1168_p13, %p1167_p12 }
  0x21   :  { %p1170_p1 = pnand %p1169_p0, %p1163_p11 }
  0x23   :  { %1173 = shalt.err (!%p1170_p1)
}
  0x24   :  { %27 = dma.hbm_to_vmem [thread:$0]  %s1491_s0, 128, %s1270_s27, [#allocation4], %s1226_s13, %s1226_s13, %s1227_s14  }
  0x25   :  { %s1228_s28 = smov [#allocation8]   ;;  %s1174_s9 = scalar_lea.hbm %s1494_s3, 1024 }
  0x26   :  { %s47_s29 = sshll.u32 %s1228_s28, 4  ;;  %p1175_p2 = scmp.ne.s32.totalorder %s1494_s3, %s1174_s9  ;;  %s48_s29 = int_to_ptr.vmem [resolvable:$true] %s47_s29 }
  0x27   :  { %p1178_p3 = scmp.lt.u32.totalorder %s1174_s9, %s1494_s3 }
  0x29   :  { %p1180_p4 = pnand %p1178_p3, %p1175_p2 }
  0x2b   :  { %1183 = shalt.err (!%p1180_p4)
}
  0x2c   :  { %s1184_s16 = scalar_lea.vmem %s48_s29, 1024  ;;  %p1189_p6 = scmp.lt.s32.totalorder %s48_s29, %s48_s29 }
  0x2d   :  { %p1185_p5 = scmp.ne.s32.totalorder %s48_s29, %s1184_s16  ;;  %p1190_p7 = scmp.lt.s32.totalorder %s1184_s16, %s1184_s16 }
  0x2f   :  { %p1191_p8 = por %p1190_p7, %p1189_p6 }
  0x31   :  { %p1192_p9 = pnand %p1191_p8, %p1185_p5 }
  0x33   :  { %1195 = shalt.err (!%p1192_p9)
}
  0x34   :  { %53 = dma.hbm_to_vmem [thread:$0]  %s1494_s3, 1024, %s48_s29, [#allocation7], %s1226_s13, %s1226_s13, %s1227_s14  }
  0x35   :  { %1218 = dma.done.wait [#allocation4], 2048  }
  0x36   :  { %1219 = vsyncadd [#allocation4], 4294965248 }
  0x37   :  { %1220 = dma.done.wait [#allocation7], 1536  }
  0x38   :  { %1221 = vsyncadd [#allocation7], 4294965760  ;;  %vm96_vm0 = vcmask 261120   ;;  %v85_v0 = vld [vmem:[#allocation6] sm:$0xff]  ;;  %v86_v1 = vld [vmem:[#allocation6 + $0x8] sm:$0xff]  ;;  %vm321_vm1 = vcmask 523264  }
  0x39   :  { %v87_v2 = vld [vmem:[#allocation6 + $0x10] sm:$0xff]  ;;  %v1028_v3 = vpack.c.bf16 %v86_v1, %v85_v0  ;;  %v88_v4 = vld [vmem:[#allocation6 + $0x18] sm:$0xff]  ;;  %v69_v5 = vld [vmem:[#allocation3] sm:$0xff]  ;;  %vm743_vm2 = vcmask 130112   ;;  %vm750_vm3 = vcmask 195712   ;;  %vm757_vm4 = vcmask 261312  }
  0x3a   :  { %v1032_v6 = vpack.c.bf16 %v88_v4, %v87_v2  ;;  %964 = vmatprep.mubr.msk.f32.mxu0 %vm96_vm0, %v69_v5  ;;  %v306_v7 = vld [vmem:[#allocation8] sm:$0xff]  ;;  %v307_v8 = vld [vmem:[#allocation8 + $0x8] sm:$0xff]  ;;  %v308_v9 = vld [vmem:[#allocation8 + $0x10] sm:$0xff]  ;;  %vm764_vm5 = vcmask 326912   ;;  %vm771_vm6 = vcmask 392512   ;;  %vm778_vm7 = vcmask 458112  }
  0x3b   :  { %1029 = vmatprep.subr.bf16.mxu0 %v1028_v3  ;;  %v309_v10 = vld [vmem:[#allocation8 + $0x18] sm:$0xff]  ;;  %v70_v11 = vld [vmem:[#allocation3 + $0x8] sm:$0xff]  ;;  %v1036_v12 = vpack.c.bf16 %v307_v8, %v306_v7  ;;  %v71_v13 = vld [vmem:[#allocation3 + $0x10] sm:$0xff]  ;;  %vm785_vm8 = vcmask 523712   ;;  %vm792_vm9 = vcmask 589312   ;;  %vm799_vm10 = vcmask 654912  }
  0x3c   :  { %1031 = vmatpush3.bf16.msra.mxu0 %v1028_v3  ;;  %v1040_v14 = vpack.c.bf16 %v309_v10, %v308_v9  ;;  %v310_v15 = vld [vmem:[#allocation8 + $0x20] sm:$0xff]  ;;  %v311_v16 = vld [vmem:[#allocation8 + $0x28] sm:$0xff]  ;;  %v72_v17 = vld [vmem:[#allocation3 + $0x18] sm:$0xff]  ;;  %vm806_vm11 = vcmask 720512   ;;  %vm813_vm12 = vcmask 786112   ;;  %vm820_vm13 = vcmask 851712  }
  0x3d   :  { %1033 = vmatprep.subr.bf16.mxu0 %v1032_v6  ;;  %1052 = vmatprep.subr.bf16.mxu1 %v1036_v12  ;;  %v73_v18 = vld [vmem:[#allocation3 + $0x20] sm:$0xff]  ;;  %v1044_v19 = vpack.c.bf16 %v311_v16, %v310_v15  ;;  %v74_v20 = vld [vmem:[#allocation3 + $0x28] sm:$0xff]  ;;  %v75_v21 = vld [vmem:[#allocation3 + $0x30] sm:$0xff]  ;;  %vm827_vm14 = vcmask 917312   ;;  %vm834_vm15 = vcmask 982912  }
  0x3e   :  { %1056 = vmatpush3.bf16.msra.mxu1 %v1036_v12  ;;  %v76_v22 = vld [vmem:[#allocation3 + $0x38] sm:$0xff]  ;;  %v77_v23 = vld [vmem:[#allocation3 + $0x40] sm:$0xff]  ;;  %v78_v24 = vld [vmem:[#allocation3 + $0x48] sm:$0xff] }
  0x3f   :  { %1053 = vmatprep.subr.bf16.mxu1 %v1040_v14  ;;  %v79_v25 = vld [vmem:[#allocation3 + $0x50] sm:$0xff]  ;;  %v80_v26 = vld [vmem:[#allocation3 + $0x58] sm:$0xff]  ;;  %v81_v27 = vld [vmem:[#allocation3 + $0x60] sm:$0xff] }
  0x40   :  { %1035 = vmatpush3.bf16.msra.mxu0 %v1032_v6  ;;  %v82_v28 = vld [vmem:[#allocation3 + $0x68] sm:$0xff]  ;;  %v83_v29 = vld [vmem:[#allocation3 + $0x70] sm:$0xff]  ;;  %v84_v30 = vld [vmem:[#allocation3 + $0x78] sm:$0xff] }
  0x41   :  { %1037 = vmatprep.subr.bf16.mxu0 %v1036_v12  ;;  %v312_v31 = vld [vmem:[#allocation8 + $0x30] sm:$0xff]  ;;  %v313_v32 = vld [vmem:[#allocation8 + $0x38] sm:$0xff]  ;;  %v861_v34 = vld [vmem:[%s1493_s2] ss:$0 sm:$0xff] }
  0x42   :  { %1057 = vmatpush3.bf16.msra.mxu1 %v1040_v14  ;;  %v1048_v33 = vpack.c.bf16 %v313_v32, %v312_v31 }
  0x43   :  { %965 = vmatmul.mubr.msk.f32.vlgmr.msra.gmra.mrb[0].mxu0 %vm96_vm0, %v70_v11  ;;  %1054 = vmatprep.subr.bf16.mxu1 %v1044_v19 }
  0x44   :  { %967 = vmatprep.mubr.msk.f32.mxu0 %vm96_vm0, %v71_v13  ;;  %1039 = vmatpush3.bf16.msra.mxu0 %v1036_v12 }
  0x45   :  { %1041 = vmatprep.subr.bf16.mxu0 %v1040_v14 }
  0x46   :  { %1058 = vmatpush3.bf16.msra.mxu1 %v1044_v19 }
  0x47   :  { %968 = vmatmul.mubr.msk.f32.gmra.mrb[2].mxu0 %vm96_vm0, %v72_v17  ;;  %1055 = vmatprep.subr.bf16.mxu1 %v1048_v33 }
  0x48   :  { %970 = vmatprep.mubr.msk.f32.mxu0 %vm96_vm0, %v73_v18  ;;  %1043 = vmatpush3.bf16.msra.mxu0 %v1040_v14 }
  0x49   :  { %1045 = vmatprep.subr.bf16.mxu0 %v1044_v19 }
  0x4a   :  { %1059 = vmatpush3.bf16.msra.mxu1 %v1048_v33 }
  0x4b   :  { %971 = vmatmul.mubr.msk.f32.gmra.mrb[4].mxu0 %vm96_vm0, %v74_v20 }
  0x4c   :  { %973 = vmatprep.mubr.msk.f32.mxu0 %vm96_vm0, %v75_v21  ;;  %1047 = vmatpush3.bf16.msra.mxu0 %v1044_v19  ;;  %v1361_v19 = vld [vmem:[%s1495_s4] ss:$0 sm:$0xff] }
  0x4d   :  { %1049 = vmatprep.subr.bf16.mxu0 %v1048_v33 }
  0x4f   :  { %974 = vmatmul.mubr.msk.f32.gmra.mrb[6].mxu0 %vm96_vm0, %v76_v22 }
  0x50   :  { %976 = vmatprep.mubr.msk.f32.mxu0 %vm96_vm0, %v77_v23  ;;  %1051 = vmatpush3.bf16.msra.mxu0 %v1048_v33 }
  0x53   :  { %977 = vmatmul.mubr.msk.f32.gmra.mrb[8].mxu0 %vm96_vm0, %v78_v24  ;;  %v1368_v24 = vld [vmem:[%s1496_s5] ss:$0 sm:$0xff] }
  0x54   :  { %979 = vmatprep.mubr.msk.f32.mxu0 %vm96_vm0, %v79_v25 }
  0x57   :  { %980 = vmatmul.mubr.msk.f32.gmra.mrb[10].mxu0 %vm96_vm0, %v80_v26 }
  0x58   :  { %982 = vmatprep.mubr.msk.f32.mxu0 %vm96_vm0, %v81_v27 }
  0x5b   :  { %983 = vmatmul.mubr.msk.f32.gmra.mrb[12].mxu0 %vm96_vm0, %v82_v28 }
  0x5c   :  { %985 = vmatprep.mubr.msk.f32.mxu0 %vm96_vm0, %v83_v29 }
  0x5f   :  { %986 = vmatmul.mubr.msk.f32.gmra.mrb[14].mxu0 %vm96_vm0, %v84_v30  ;;  %vm841_vm0 = vcmask 1048512  }
 0x116   :  { %v966_v35 = vpop.f32.mrb[0].mxu0 }
 0x117   :  { %v217_v36 = vadd.f32 %v966_v35, %v861_v34  ;;  %v211_v37 = vpop.f32.mrb[1].mxu0 }
 0x118   :  { %v212_v38 = vadd.f32 %v861_v34, %v211_v37 }
 0x119   :  { %v291_v41 = vmax.f32 %v217_v36, 0.0 }
 0x11a   :  { %v290_v39 = vmax.f32 %v212_v38, 0.0  ;;  %v969_v40 = vpop.f32.mrb[2].mxu0 }
 0x11b   :  { %v227_v42 = vadd.f32 %v969_v40, %v861_v34  ;;  %v221_v43 = vpop.f32.mrb[3].mxu0 }
 0x11c   :  { %v222_v44 = vadd.f32 %v861_v34, %v221_v43  ;;  %1004 = vmatprep.mubr.msk.f32.mxu0 %vm321_vm1, %v290_v39 }
 0x11d   :  { %1005 = vmatmul.mubr.msk.f32.vlgmr.msra.gmra.mrb[16].mxu0 %vm321_vm1, %v291_v41  ;;  %v293_v47 = vmax.f32 %v227_v42, 0.0 }
 0x11e   :  { %v292_v45 = vmax.f32 %v222_v44, 0.0  ;;  %v972_v46 = vpop.f32.mrb[4].mxu0 }
 0x11f   :  { %v237_v48 = vadd.f32 %v972_v46, %v861_v34  ;;  %v231_v49 = vpop.f32.mrb[5].mxu0 }
 0x120   :  { %v232_v50 = vadd.f32 %v861_v34, %v231_v49  ;;  %1007 = vmatprep.mubr.msk.f32.mxu1 %vm321_vm1, %v292_v45 }
 0x121   :  { %v295_v51 = vmax.f32 %v237_v48, 0.0  ;;  %1008 = vmatmul.mubr.msk.f32.vlgmr.msra.gmra.mrb[0].mxu1 %vm321_vm1, %v293_v47 }
 0x122   :  { %v294_v52 = vmax.f32 %v232_v50, 0.0  ;;  %v975_v53 = vpop.f32.mrb[6].mxu0 }
 0x123   :  { %v247_v54 = vadd.f32 %v975_v53, %v861_v34  ;;  %v241_v55 = vpop.f32.mrb[7].mxu0 }
 0x124   :  { %v242_v56 = vadd.f32 %v861_v34, %v241_v55  ;;  %1010 = vmatprep.mubr.msk.f32.mxu1 %vm321_vm1, %v294_v52 }
 0x125   :  { %v297_v57 = vmax.f32 %v247_v54, 0.0  ;;  %1011 = vmatmul.mubr.msk.f32.gmra.mrb[2].mxu1 %vm321_vm1, %v295_v51 }
 0x126   :  { %v296_v58 = vmax.f32 %v242_v56, 0.0  ;;  %v978_v59 = vpop.f32.mrb[8].mxu0 }
 0x127   :  { %v257_v60 = vadd.f32 %v978_v59, %v861_v34  ;;  %v251_v61 = vpop.f32.mrb[9].mxu0 }
 0x128   :  { %v252_v62 = vadd.f32 %v861_v34, %v251_v61  ;;  %1013 = vmatprep.mubr.msk.f32.mxu1 %vm321_vm1, %v296_v58 }
 0x129   :  { %v299_v63 = vmax.f32 %v257_v60, 0.0  ;;  %1014 = vmatmul.mubr.msk.f32.gmra.mrb[4].mxu1 %vm321_vm1, %v297_v57 }
 0x12a   :  { %v298_v0 = vmax.f32 %v252_v62, 0.0  ;;  %v981_v1 = vpop.f32.mrb[10].mxu0 }
 0x12b   :  { %v267_v2 = vadd.f32 %v981_v1, %v861_v34  ;;  %v261_v3 = vpop.f32.mrb[11].mxu0 }
 0x12c   :  { %v262_v4 = vadd.f32 %v861_v34, %v261_v3  ;;  %1016 = vmatprep.mubr.msk.f32.mxu1 %vm321_vm1, %v298_v0 }
 0x12d   :  { %v301_v5 = vmax.f32 %v267_v2, 0.0  ;;  %1017 = vmatmul.mubr.msk.f32.gmra.mrb[6].mxu1 %vm321_vm1, %v299_v63 }
 0x12e   :  { %v300_v6 = vmax.f32 %v262_v4, 0.0  ;;  %v984_v7 = vpop.f32.mrb[12].mxu0 }
 0x12f   :  { %v277_v8 = vadd.f32 %v984_v7, %v861_v34  ;;  %v271_v9 = vpop.f32.mrb[13].mxu0 }
 0x130   :  { %v272_v10 = vadd.f32 %v861_v34, %v271_v9  ;;  %1019 = vmatprep.mubr.msk.f32.mxu1 %vm321_vm1, %v300_v6 }
 0x131   :  { %v303_v11 = vmax.f32 %v277_v8, 0.0  ;;  %1020 = vmatmul.mubr.msk.f32.gmra.mrb[8].mxu1 %vm321_vm1, %v301_v5 }
 0x132   :  { %v302_v12 = vmax.f32 %v272_v10, 0.0  ;;  %v987_v13 = vpop.f32.mrb[14].mxu0 }
 0x133   :  { %v287_v14 = vadd.f32 %v987_v13, %v861_v34  ;;  %v281_v15 = vpop.f32.mrb[15].mxu0 }
 0x134   :  { %v282_v16 = vadd.f32 %v861_v34, %v281_v15  ;;  %1022 = vmatprep.mubr.msk.f32.mxu1 %vm321_vm1, %v302_v12 }
 0x135   :  { %v305_v17 = vmax.f32 %v287_v14, 0.0  ;;  %1023 = vmatmul.mubr.msk.f32.gmra.mrb[10].mxu1 %vm321_vm1, %v303_v11 }
 0x136   :  { %v304_v18 = vmax.f32 %v282_v16, 0.0 }
 0x138   :  { %1025 = vmatprep.mubr.msk.f32.mxu1 %vm321_vm1, %v304_v18 }
 0x139   :  { %1026 = vmatmul.mubr.msk.f32.gmra.mrb[12].mxu1 %vm321_vm1, %v305_v17 }
 0x1f0   :  { %v1006_v20 = vpop.f32.mrb[16].mxu0 }
 0x1f1   :  { %v442_v21 = vadd.f32 %v1006_v20, %v1361_v19  ;;  %v436_v22 = vpop.f32.mrb[17].mxu0 }
 0x1f2   :  { %v437_v23 = vadd.f32 %v1361_v19, %v436_v22 }
 0x1f3   :  { %v516_v25 = vmax.f32 %v442_v21, 0.0 }
 0x1f4   :  { %v515_v26 = vmax.f32 %v437_v23, 0.0  ;;  %v1009_v27 = vpop.f32.mrb[0].mxu1 }
 0x1f5   :  { %v452_v28 = vadd.f32 %v1009_v27, %v1361_v19  ;;  %v446_v29 = vpop.f32.mrb[1].mxu1  ;;  %v539_v30 = vmul.f32 %v1368_v24, %v516_v25 }
 0x1f6   :  { %v447_v31 = vadd.f32 %v1361_v19, %v446_v29  ;;  %v538_v34 = vmul.f32 %v1368_v24, %v515_v26 }
 0x1f7   :  { %v518_v32 = vmax.f32 %v452_v28, 0.0  ;;  %v557_v33 = vsel %vm321_vm1, %v539_v30, 0.0 }
 0x1f8   :  { %v517_v35 = vmax.f32 %v447_v31, 0.0  ;;  %v1012_v36 = vpop.f32.mrb[2].mxu1  ;;  %558 = vadd.xlane.f32.xlu0 %v557_v33  ;;  %v554_v43 = vsel %vm321_vm1, %v538_v34, 0.0 }
 0x1f9   :  { %v462_v37 = vadd.f32 %v1012_v36, %v1361_v19  ;;  %v456_v38 = vpop.f32.mrb[3].mxu1  ;;  %v541_v39 = vmul.f32 %v1368_v24, %v518_v32 }
 0x1fa   :  { %v457_v40 = vadd.f32 %v1361_v19, %v456_v38  ;;  %v540_v44 = vmul.f32 %v1368_v24, %v517_v35  ;;  %v1419_v38 = vstv %s1497_s6  ;;  %s1229_s6 = smov [#allocation9]  }
 0x1fb   :  { %v520_v41 = vmax.f32 %v462_v37, 0.0  ;;  %v563_v42 = vsel %vm321_vm1, %v541_v39, 0.0  ;;  %s851_s19 = sshll.u32 %s1229_s6, 4  ;;  %s852_s19 = int_to_ptr.vmem [resolvable:$true] %s851_s19 }
 0x1fc   :  { %v519_v45 = vmax.f32 %v457_v40, 0.0  ;;  %564 = vadd.xlane.f32.xlu1 %v563_v42  ;;  %v1015_v46 = vpop.f32.mrb[4].mxu1  ;;  %555 = vadd.xlane.f32.xlu0 %v554_v43  ;;  %v560_v52 = vsel %vm321_vm1, %v540_v44, 0.0  ;;  %s1196_s20 = scalar_lea.vmem %s852_s19, 16  ;;  %s1200_s21 = scalar_lea.vmem %s852_s19, 32 }
 0x1fd   :  { %v472_v47 = vadd.f32 %v1015_v46, %v1361_v19  ;;  %v466_v48 = vpop.f32.mrb[5].mxu1  ;;  %v543_v53 = vmul.f32 %v1368_v24, %v520_v41  ;;  %p1197_p10 = scmp.ne.s32.totalorder %s852_s19, %s1196_s20  ;;  %p1201_p11 = scmp.lt.s32.totalorder %s852_s19, %s852_s19 }
 0x1fe   :  { %v467_v49 = vadd.f32 %v1361_v19, %v466_v48  ;;  %v542_v50 = vmul.f32 %v1368_v24, %v519_v45  ;;  %p1202_p12 = scmp.lt.s32.totalorder %s1200_s21, %s1196_s20 }
 0x1ff   :  { %v522_v51 = vmax.f32 %v472_v47, 0.0  ;;  %v569_v62 = vsel %vm321_vm1, %v543_v53, 0.0 }
 0x200   :  { %v521_v54 = vmax.f32 %v467_v49, 0.0  ;;  %v1018_v55 = vpop.f32.mrb[6].mxu1  ;;  %561 = vadd.xlane.f32.xlu1 %v560_v52  ;;  %v566_v56 = vsel %vm321_vm1, %v542_v50, 0.0  ;;  %p1203_p13 = por %p1202_p12, %p1201_p11 }
 0x201   :  { %v482_v57 = vadd.f32 %v1018_v55, %v1361_v19  ;;  %v476_v58 = vpop.f32.mrb[7].mxu1  ;;  %567 = vadd.xlane.f32.xlu0 %v566_v56  ;;  %v545_v63 = vmul.f32 %v1368_v24, %v522_v51 }
 0x202   :  { %v477_v59 = vadd.f32 %v1361_v19, %v476_v58  ;;  %v544_v60 = vmul.f32 %v1368_v24, %v521_v54  ;;  %p1204_p0 = pnand %p1203_p13, %p1197_p10 }
 0x203   :  { %v524_v61 = vmax.f32 %v482_v57, 0.0  ;;  %v575_v8 = vsel %vm321_vm1, %v545_v63, 0.0 }
 0x204   :  { %v523_v0 = vmax.f32 %v477_v59, 0.0  ;;  %v1021_v1 = vpop.f32.mrb[8].mxu1  ;;  %570 = vadd.xlane.f32.xlu1 %v569_v62  ;;  %v572_v2 = vsel %vm321_vm1, %v544_v60, 0.0 }
 0x205   :  { %v492_v3 = vadd.f32 %v1021_v1, %v1361_v19  ;;  %v486_v4 = vpop.f32.mrb[9].mxu1  ;;  %573 = vadd.xlane.f32.xlu0 %v572_v2  ;;  %v547_v9 = vmul.f32 %v1368_v24, %v524_v61  ;;  %v732_v2 = vlaneseq }
 0x206   :  { %v487_v5 = vadd.f32 %v1361_v19, %v486_v4  ;;  %v546_v6 = vmul.f32 %v1368_v24, %v523_v0 }
 0x207   :  { %v526_v7 = vmax.f32 %v492_v3, 0.0  ;;  %v581_v18 = vsel %vm321_vm1, %v547_v9, 0.0 }
 0x208   :  { %v525_v10 = vmax.f32 %v487_v5, 0.0  ;;  %v1024_v11 = vpop.f32.mrb[10].mxu1  ;;  %576 = vadd.xlane.f32.xlu1 %v575_v8  ;;  %v578_v12 = vsel %vm321_vm1, %v546_v6, 0.0 }
 0x209   :  { %v502_v13 = vadd.f32 %v1024_v11, %v1361_v19  ;;  %v496_v14 = vpop.f32.mrb[11].mxu1  ;;  %579 = vadd.xlane.f32.xlu0 %v578_v12  ;;  %v549_v20 = vmul.f32 %v1368_v24, %v526_v7 }
 0x20a   :  { %v497_v15 = vadd.f32 %v1361_v19, %v496_v14  ;;  %v548_v16 = vmul.f32 %v1368_v24, %v525_v10 }
 0x20b   :  { %v528_v17 = vmax.f32 %v502_v13, 0.0  ;;  %v587_v30 = vsel %vm321_vm1, %v549_v20, 0.0  ;;  %v1432_v13 = vand.u32 127, %v732_v2 }
 0x20c   :  { %v527_v21 = vmax.f32 %v497_v15, 0.0  ;;  %v1027_v22 = vpop.f32.mrb[12].mxu1  ;;  %582 = vadd.xlane.f32.xlu1 %v581_v18  ;;  %v584_v23 = vsel %vm321_vm1, %v548_v16, 0.0 }
 0x20d   :  { %v512_v25 = vadd.f32 %v1027_v22, %v1361_v19  ;;  %v506_v26 = vpop.f32.mrb[13].mxu1  ;;  %585 = vadd.xlane.f32.xlu0 %v584_v23  ;;  %v551_v31 = vmul.f32 %v1368_v24, %v528_v17  ;;  %v1435_v23 = vshrl.u32 %v732_v2, 7 }
 0x20e   :  { %v507_v27 = vadd.f32 %v1361_v19, %v506_v26  ;;  %v550_v28 = vmul.f32 %v1368_v24, %v527_v21 }
 0x20f   :  { %v530_v29 = vmax.f32 %v512_v25, 0.0  ;;  %v593_v35 = vsel %vm321_vm1, %v551_v31, 0.0 }
 0x210   :  { %v529_v32 = vmax.f32 %v507_v27, 0.0  ;;  %588 = vadd.xlane.f32.xlu1 %v587_v30  ;;  %v590_v33 = vsel %vm321_vm1, %v550_v28, 0.0  ;;  %v738_v27 = vadd.s32 4294967288, %v1432_v13  ;;  %v752_v28 = vadd.s32 4294967272, %v1432_v13 }
 0x211   :  { %591 = vadd.xlane.f32.xlu0 %v590_v33  ;;  %v553_v36 = vmul.f32 %v1368_v24, %v530_v29 }
 0x212   :  { %v552_v34 = vmul.f32 %v1368_v24, %v529_v32 }
 0x213   :  { %v599_v37 = vsel %vm321_vm1, %v553_v36, 0.0 }
 0x214   :  { %594 = vadd.xlane.f32.xlu1 %v593_v35  ;;  %v596_v19 = vsel %vm321_vm1, %v552_v34, 0.0  ;;  %v736_v34 = vsub.s32 %v1432_v13, %v1435_v23  ;;  %v745_v35 = vadd.s32 4294967280, %v1432_v13 }
 0x215   :  { %597 = vadd.xlane.f32.xlu0 %v596_v19 }
 0x218   :  { %600 = vadd.xlane.f32.xlu1 %v599_v37 }
 0x285   :  { %v559_v39 = vpop.xlane.xlu0 %558 }
 0x286   :  { %v605_v40 = vadd.f32 %v1419_v38, %v559_v39  ;;  %v759_v39 = vadd.s32 4294967264, %v1432_v13 }
 0x288   :  { %v897_v41 = vmul.f32 -1.442695, %v605_v40 }
 0x289   :  { %v565_v42 = vpop.xlane.xlu1 %564  ;;  %v556_v43 = vpop.xlane.xlu0 %555 }
 0x28a   :  { %1066 = vpow2.f32 %v897_v41  ;;  %v607_v24 = vadd.f32 %v1419_v38, %v565_v42  ;;  %v604_v44 = vadd.f32 %v1419_v38, %v556_v43  ;;  %v741_v43 = vsub.s32 %v738_v27, %v1435_v23 }
 0x28c   :  { %v899_v45 = vmul.f32 -1.442695, %v607_v24  ;;  %v896_v46 = vmul.f32 -1.442695, %v604_v44  ;;  %v755_v24 = vsub.s32 %v752_v28, %v1435_v23 }
 0x28d   :  { %v562_v47 = vpop.xlane.xlu1 %561 }
 0x28e   :  { %1068 = vpow2.f32 %v899_v45  ;;  %v606_v48 = vadd.f32 %v1419_v38, %v562_v47  ;;  %v568_v49 = vpop.xlane.xlu0 %567 }
 0x28f   :  { %1070 = vpow2.f32 %v896_v46  ;;  %v608_v50 = vadd.f32 %v1419_v38, %v568_v49 }
 0x290   :  { %v898_v51 = vmul.f32 -1.442695, %v606_v48 }
 0x291   :  { %v900_v52 = vmul.f32 -1.442695, %v608_v50  ;;  %v571_v53 = vpop.xlane.xlu1 %570  ;;  %v748_v50 = vsub.s32 %v745_v35, %v1435_v23  ;;  %v808_v35 = vadd.s32 4294967208, %v1432_v13 }
 0x292   :  { %1072 = vpow2.f32 %v898_v51  ;;  %v609_v54 = vadd.f32 %v1419_v38, %v571_v53  ;;  %v574_v55 = vpop.xlane.xlu0 %573  ;;  %v766_v51 = vadd.s32 4294967256, %v1432_v13 }
 0x293   :  { %1074 = vpow2.f32 %v900_v52  ;;  %v610_v56 = vadd.f32 %v1419_v38, %v574_v55  ;;  %v762_v55 = vsub.s32 %v759_v39, %v1435_v23 }
 0x294   :  { %v1067_v57 = vpop.eup %1066  ;;  %v901_v58 = vmul.f32 -1.442695, %v609_v54 }
 0x295   :  { %v669_v59 = vadd.f32 1.0, %v1067_v57  ;;  %v902_v60 = vmul.f32 -1.442695, %v610_v56  ;;  %v577_v61 = vpop.xlane.xlu1 %576 }
 0x296   :  { %1076 = vpow2.f32 %v901_v58  ;;  %v611_v62 = vadd.f32 %v1419_v38, %v577_v61  ;;  %v580_v63 = vpop.xlane.xlu0 %579  ;;  %v773_v61 = vadd.s32 4294967248, %v1432_v13 }
 0x297   :  { %v612_v0 = vadd.f32 %v1419_v38, %v580_v63  ;;  %1078 = vpow2.f32 %v902_v60 }
 0x298   :  { %v1069_v1 = vpop.eup %1068  ;;  %v903_v3 = vmul.f32 -1.442695, %v611_v62  ;;  %1080 = vrcp.f32 %v669_v59 }
 0x299   :  { %v1071_v4 = vpop.eup %1070  ;;  %v671_v5 = vadd.f32 1.0, %v1069_v1  ;;  %v904_v6 = vmul.f32 -1.442695, %v612_v0  ;;  %v583_v7 = vpop.xlane.xlu1 %582  ;;  %v780_v1 = vadd.s32 4294967240, %v1432_v13 }
 0x29a   :  { %v668_v8 = vadd.f32 1.0, %v1071_v4  ;;  %1082 = vpow2.f32 %v903_v3  ;;  %v613_v9 = vadd.f32 %v1419_v38, %v583_v7  ;;  %v586_v10 = vpop.xlane.xlu0 %585 }
 0x29b   :  { %1084 = vrcp.f32 %v671_v5  ;;  %v614_v11 = vadd.f32 %v1419_v38, %v586_v10 }
 0x29c   :  { %v1073_v12 = vpop.eup %1072  ;;  %1086 = vrcp.f32 %v668_v8  ;;  %v905_v14 = vmul.f32 -1.442695, %v613_v9  ;;  %v787_v8 = vadd.s32 4294967232, %v1432_v13 }
 0x29d   :  { %v1075_v15 = vpop.eup %1074  ;;  %v670_v16 = vadd.f32 1.0, %v1073_v12  ;;  %1088 = vpow2.f32 %v904_v6  ;;  %v906_v17 = vmul.f32 -1.442695, %v614_v11  ;;  %v589_v18 = vpop.xlane.xlu1 %588  ;;  %v776_v12 = vsub.s32 %v773_v61, %v1435_v23 }
 0x29e   :  { %v672_v20 = vadd.f32 1.0, %v1075_v15  ;;  %1090 = vpow2.f32 %v905_v14  ;;  %v615_v21 = vadd.f32 %v1419_v38, %v589_v18  ;;  %v592_v22 = vpop.xlane.xlu0 %591  ;;  %v794_v18 = vadd.s32 4294967224, %v1432_v13 }
 0x29f   :  { %1092 = vrcp.f32 %v670_v16  ;;  %v616_v25 = vadd.f32 %v1419_v38, %v592_v22 }
 0x2a0   :  { %v1077_v26 = vpop.eup %1076  ;;  %1094 = vrcp.f32 %v672_v20  ;;  %v907_v29 = vmul.f32 -1.442695, %v615_v21 }
 0x2a1   :  { %v673_v30 = vadd.f32 1.0, %v1077_v26  ;;  %1096 = vpow2.f32 %v906_v17  ;;  %v908_v31 = vmul.f32 -1.442695, %v616_v25  ;;  %v595_v32 = vpop.xlane.xlu1 %594  ;;  %v1079_v33 = vpop.eup %1078  ;;  %v783_v17 = vsub.s32 %v780_v1, %v1435_v23 }
 0x2a2   :  { %1098 = vpow2.f32 %v907_v29  ;;  %v617_v36 = vadd.f32 %v1419_v38, %v595_v32  ;;  %v598_v19 = vpop.xlane.xlu0 %597  ;;  %v1081_v37 = vpop.eup %1080  ;;  %v674_v40 = vadd.f32 1.0, %v1079_v33  ;;  %v790_v26 = vsub.s32 %v787_v8, %v1435_v23 }
 0x2a3   :  { %1100 = vrcp.f32 %v673_v30  ;;  %v618_v41 = vadd.f32 %v1419_v38, %v598_v19  ;;  %v742_v60 = vrot.slane %v1081_v37, %v741_v43  ;;  %v801_v29 = vadd.s32 4294967216, %v1432_v13 }
 0x2a4   :  { %v1083_v42 = vpop.eup %1082  ;;  %1102 = vpow2.f32 %v908_v31  ;;  %v909_v44 = vmul.f32 -1.442695, %v617_v36  ;;  %v815_v37 = vadd.s32 4294967200, %v1432_v13 }
 0x2a5   :  { %v1085_v45 = vpop.eup %1084  ;;  %1104 = vrcp.f32 %v674_v40  ;;  %v675_v46 = vadd.f32 1.0, %v1083_v42  ;;  %v910_v47 = vmul.f32 -1.442695, %v618_v41  ;;  %v601_v48 = vpop.xlane.xlu1 %600  ;;  %v804_v42 = vsub.s32 %v801_v29, %v1435_v23 }
 0x2a6   :  { %v1087_v49 = vpop.eup %1086  ;;  %1106 = vpow2.f32 %v909_v44  ;;  %v619_v52 = vadd.f32 %v1419_v38, %v601_v48  ;;  %v769_v38 = vsub.s32 %v766_v51, %v1435_v23  ;;  %v756_v3 = vrot.slane %v1085_v45, %v755_v24 }
 0x2a7   :  { %v1089_v53 = vpop.eup %1088  ;;  %v737_v54 = vrot.slane %v1087_v49, %v736_v34  ;;  %1108 = vrcp.f32 %v675_v46  ;;  %v797_v34 = vsub.s32 %v794_v18, %v1435_v23  ;;  %v811_v45 = vsub.s32 %v808_v35, %v1435_v23 }
 0x2a8   :  { %v1091_v56 = vpop.eup %1090  ;;  %v676_v57 = vadd.f32 1.0, %v1089_v53  ;;  %1110 = vpow2.f32 %v910_v47  ;;  %v911_v58 = vmul.f32 -1.442695, %v619_v52  ;;  %v822_v46 = vadd.s32 4294967192, %v1432_v13 }
 0x2a9   :  { %v1093_v59 = vpop.eup %1092  ;;  %v677_v62 = vadd.f32 1.0, %v1091_v56  ;;  %v744_v4 = vsel %vm743_vm2, %v742_v60, %v737_v54  ;;  %v818_v49 = vsub.s32 %v815_v37, %v1435_v23  ;;  %v829_v53 = vadd.s32 4294967184, %v1432_v13 }
 0x2aa   :  { %v1095_v63 = vpop.eup %1094  ;;  %v749_v0 = vrot.slane %v1093_v59, %v748_v50  ;;  %1112 = vrcp.f32 %v676_v57  ;;  %v825_v56 = vsub.s32 %v822_v46, %v1435_v23 }
 0x2ab   :  { %v1097_v2 = vpop.eup %1096  ;;  %v763_v5 = vrot.slane %v1095_v63, %v762_v55  ;;  %1114 = vrcp.f32 %v677_v62  ;;  %v832_v62 = vsub.s32 %v829_v53, %v1435_v23 }
 0x2ac   :  { %v1099_v6 = vpop.eup %1098  ;;  %v751_v7 = vsel %vm750_vm3, %v749_v0, %v744_v4  ;;  %v678_v9 = vadd.f32 1.0, %v1097_v2  ;;  %1116 = vpow2.f32 %v911_v58  ;;  %v836_v58 = vadd.s32 4294967176, %v1432_v13 }
 0x2ad   :  { %v1101_v10 = vpop.eup %1100  ;;  %v758_v11 = vsel %vm757_vm4, %v756_v3, %v751_v7  ;;  %v679_v14 = vadd.f32 1.0, %v1099_v6 }
 0x2ae   :  { %v1103_v15 = vpop.eup %1102  ;;  %v770_v16 = vrot.slane %v1101_v10, %v769_v38  ;;  %1118 = vrcp.f32 %v678_v9  ;;  %v765_v21 = vsel %vm764_vm5, %v763_v5, %v758_v11  ;;  %v839_v1 = vsub.s32 %v836_v58, %v1435_v23 }
 0x2af   :  { %v1105_v20 = vpop.eup %1104  ;;  %1120 = vrcp.f32 %v679_v14  ;;  %v680_v22 = vadd.f32 1.0, %v1103_v15 }
 0x2b0   :  { %v1107_v25 = vpop.eup %1106  ;;  %v777_v28 = vrot.slane %v1105_v20, %v776_v12  ;;  %v772_v32 = vsel %vm771_vm6, %v770_v16, %v765_v21 }
 0x2b1   :  { %v1109_v27 = vpop.eup %1108  ;;  %1122 = vrcp.f32 %v680_v22  ;;  %v681_v30 = vadd.f32 1.0, %v1107_v25 }
 0x2b2   :  { %v1111_v31 = vpop.eup %1110  ;;  %v784_v33 = vrot.slane %v1109_v27, %v783_v17  ;;  %v779_v40 = vsel %vm778_vm7, %v777_v28, %v772_v32 }
 0x2b3   :  { %1124 = vrcp.f32 %v681_v30  ;;  %v682_v36 = vadd.f32 1.0, %v1111_v31 }
 0x2b4   :  { %v1113_v19 = vpop.eup %1112  ;;  %v786_v24 = vsel %vm785_vm8, %v784_v33, %v779_v40 }
 0x2b5   :  { %v1115_v39 = vpop.eup %1114  ;;  %v791_v41 = vrot.slane %v1113_v19, %v790_v26  ;;  %1126 = vrcp.f32 %v682_v36 }
 0x2b6   :  { %v1117_v43 = vpop.eup %1116  ;;  %v798_v44 = vrot.slane %v1115_v39, %v797_v34 }
 0x2b7   :  { %v683_v47 = vadd.f32 1.0, %v1117_v43  ;;  %v793_v52 = vsel %vm792_vm9, %v791_v41, %v786_v24 }
 0x2b8   :  { %v1119_v48 = vpop.eup %1118  ;;  %v800_v55 = vsel %vm799_vm10, %v798_v44, %v793_v52 }
 0x2b9   :  { %v1121_v50 = vpop.eup %1120  ;;  %v805_v51 = vrot.slane %v1119_v48, %v804_v42  ;;  %1128 = vrcp.f32 %v683_v47 }
 0x2ba   :  { %v812_v54 = vrot.slane %v1121_v50, %v811_v45 }
 0x2bb   :  { %v1123_v57 = vpop.eup %1122  ;;  %v807_v60 = vsel %vm806_vm11, %v805_v51, %v800_v55 }
 0x2bc   :  { %v819_v61 = vrot.slane %v1123_v57, %v818_v49  ;;  %v814_v63 = vsel %vm813_vm12, %v812_v54, %v807_v60 }
 0x2bd   :  { %v1125_v59 = vpop.eup %1124 }
 0x2be   :  { %v826_v0 = vrot.slane %v1125_v59, %v825_v56  ;;  %v821_v2 = vsel %vm820_vm13, %v819_v61, %v814_v63 }
 0x2bf   :  { %v1127_v38 = vpop.eup %1126 }
 0x2c0   :  { %v833_v3 = vrot.slane %v1127_v38, %v832_v62  ;;  %v828_v4 = vsel %vm827_vm14, %v826_v0, %v821_v2 }
 0x2c2   :  { %v835_v6 = vsel %vm834_vm15, %v833_v3, %v828_v4 }
 0x2c3   :  { %v1129_v5 = vpop.eup %1128 }
 0x2c4   :  { %v840_v13 = vrot.slane %v1129_v5, %v839_v1 }
 0x2c6   :  { %v842_v7 = vsel %vm841_vm0, %v840_v13, %v835_v6 }
 0x2c7   :  { %844 = vst [vmem:[#allocation9] sm:$0x1] %v842_v7 }
 0x2c8   :  { %1207 = shalt.err (!%p1204_p0)
}
 0x2c9   :  { %s1208_s24 = scalar_lea.hbm %s1498_s7, 16 }
 0x2ca   :  { %p1209_p1 = scmp.ne.s32.totalorder %s1498_s7, %s1208_s24  ;;  %p1212_p2 = scmp.lt.u32.totalorder %s1208_s24, %s1498_s7 }
 0x2cc   :  { %p1214_p3 = pnand %p1212_p2, %p1209_p1 }
 0x2ce   :  { %1217 = shalt.err (!%p1214_p3)
}
 0x2cf   :  { %854 = dma.vmem_to_hbm [thread:$0]  %s852_s19, 16, %s1498_s7, [#allocation5]  }
 0x2d0   :  { %1222 = dma.done.wait [#allocation5], 16  }
 0x2d1   :  { %1223 = vsyncadd [#allocation5], 4294967280 }
 0x2d2   :  { %858 = vsyncpa [#allocation4], 1 }
 0x2d3   :  { %859 = vsyncpa [#allocation7], 1 }
 0x2d4   :  { %860 = vsyncpa [#allocation5], 1 }

</bundles_post_ra>
